<compile_context>
chip_gen: v5e
topology: v5e:2x2
jax: 0.10.0
libtpu: 0.0.40
codegen_flags: <defaults>
</compile_context>

<pallas_src>
import functools

import jax
import jax.numpy as jnp
from jax.experimental import pallas as pl
from jax.experimental.pallas import tpu as pltpu


def _round_up(x, m):
    return (x + m - 1) // m * m


# ----------------------------- Pallas kernel --------------------------------
def _bow_embed_kernel(idx_ref, embT_ref, o_ref, *, max_value):
    """o (D, t_hw) = emb^T @ one_hot_counts^T, i.e. per-pixel 3-channel BOW embed."""
    idx = idx_ref[...]                                   # (3, t_hw) int32, raw values
    t_hw = idx.shape[1]
    vocab = embT_ref.shape[1]                            # 3 * max_value

    # Transposed bag-of-words counts: vocab on sublanes, pixels on lanes.
    # Channel offsets make the three matches disjoint, so OR == sum and one
    # bool->f32 cast suffices.  The +offset adds act on tiny (1, t_hw) rows.
    v_iota = jax.lax.broadcasted_iota(jnp.int32, (vocab, t_hw), 0)
    hit = (
        (idx[0:1, :] == v_iota)
        | ((idx[1:2, :] + max_value) == v_iota)
        | ((idx[2:3, :] + 2 * max_value) == v_iota)
    )
    counts_t = hit.astype(jnp.float32)                   # (vocab, t_hw), exact 0/1

    # gather + sum over channels, already channel-first: (D, vocab) @ (vocab, t_hw).
    o_ref[...] = jnp.dot(
        embT_ref[...], counts_t, preferred_element_type=jnp.float32
    ).astype(o_ref.dtype)


# ------------------------------ wrapper --------------------------------------
def image_bow_embedding(inputs, embedding, max_value, *, out_dtype=jnp.float32):
    """inputs: (B, 3, H, W) integer-valued; embedding: (3*max_value, D) f32.

    Returns (B, D, H, W) `out_dtype`, matching torch's
    `embedding((inputs + offsets).long()).sum(1).permute(0, 3, 1, 2)`.
    """
    B, C, H, W = inputs.shape
    assert C == 3, "ImageBOWEmbedding assumes 3 input channels"
    vocab, D = embedding.shape
    assert vocab == 3 * max_value

    HW = H * W
    # Free reshape: NCHW row-major -> (B, 3, HW); no data movement.
    idx = inputs.astype(jnp.int32).reshape(B, 3, HW)

    # Lane tile over the pixel axis.  Small/medium images: one lane-dense tile
    # covering the whole image (block last dim == full dim, so no (8,128)
    # constraint and no padding).  Huge images: 2048-ish lane tiles (~1 MB
    # output blocks), preferring a tile that divides HW to avoid a pad+slice.
    if HW <= 4096:
        t_hw, HW_pad = HW, HW
    else:
        t_hw = next((t for t in (2048, 1024, 512, 256, 128) if HW % t == 0), 2048)
        HW_pad = _round_up(HW, t_hw)
        if HW_pad != HW:
            idx = jnp.pad(idx, ((0, 0), (0, 0), (0, HW_pad - HW)))  # pad = valid idx 0

    # One-time tiny (48, D) -> (D, 48) table transpose, outside the hot path.
    emb_t = jnp.transpose(embedding.astype(jnp.float32))

    grid = (B, HW_pad // t_hw)
    out = pl.pallas_call(
        functools.partial(_bow_embed_kernel, max_value=max_value),
        out_shape=jax.ShapeDtypeStruct((B, D, HW_pad), out_dtype),
        grid=grid,
        in_specs=[
            # batch dim squeezed; channels on sublanes, pixels lane-dense.
            pl.BlockSpec((None, 3, t_hw), lambda b, j: (b, 0, j)),
            # embedding table resident across all grid steps.
            pl.BlockSpec((D, vocab), lambda b, j: (0, 0)),
        ],
        # channels-first output block, pixels lane-dense.
        out_specs=pl.BlockSpec((None, D, t_hw), lambda b, j: (b, 0, j)),
        compiler_params=pltpu.CompilerParams(
            dimension_semantics=("parallel", "parallel")  # B x hw_tiles split on v7x
        ),
    )(idx, emb_t)

    if HW_pad != HW:
        out = out[:, :, :HW]
    # Free reshape (split last axis) -> torch's (B, D, H, W); no permute needed.
    return out.reshape(B, D, H, W)


# ------------------------------ parameters -----------------------------------
def init_params(key, max_value, embedding_dim):
    # nn.Embedding default init: N(0, 1).  (initialize_parameters only touches
    # Linear layers, so onpolicy=True is a no-op for this module.)
    return jax.random.normal(key, (3 * max_value, embedding_dim), jnp.float32)


if __name__ == "__main__":
    key = jax.random.PRNGKey(0)
    k_idx, k_emb = jax.random.split(key)

    B, C, H, W = 2, 3, 8, 8
    max_value = 16
    embedding_dim = 128

    inputs = jax.random.randint(k_idx, (B, C, H, W), 0, max_value, jnp.int32)
    embedding = init_params(k_emb, max_value, embedding_dim)

    out = image_bow_embedding(inputs, embedding, max_value)
    out = jax.block_until_ready(out)

    # Pure-JAX reference (same math as the torch module).
    offsets = jnp.array([0, max_value, 2 * max_value], jnp.int32)
    idx_ref = inputs + offsets[None, :, None, None]                 # (B, 3, H, W)
    ref = jnp.take(embedding, idx_ref, axis=0).sum(axis=1)          # (B, H, W, D)
    ref = jnp.transpose(ref, (0, 3, 1, 2))                          # (B, D, H, W)

    assert out.shape == (B, embedding_dim, H, W), out.shape
    assert out.dtype == jnp.float32
    assert jnp.allclose(out, ref, rtol=1e-4, atol=1e-4), float(
        jnp.abs(out - ref).max()
    )
    print("KERNEL_OK")
</pallas_src>

<mosaic_0001>
module attributes {stable_mosaic.version = 11 : i64} {
  func.func @_bow_embed_kernel(%arg0: i32, %arg1: i32, %arg2: memref<1x3x64xi32, #tpu.memory_space<vmem>>, %arg3: memref<128x48xf32, #tpu.memory_space<vmem>>, %arg4: memref<1x128x64xf32, #tpu.memory_space<vmem>>) attributes {dimension_semantics = [#tpu.dimension_semantics<parallel>, #tpu.dimension_semantics<parallel>], iteration_bounds = array<i64: 2, 1>, scalar_prefetch = 0 : i64, scratch_operands = 0 : i64, tpu.core_type = #tpu.core_type<tc>, window_params = [{transform_indices = @transform_0, window_bounds = array<i64: 1, 3, 64>}, {pipeline_mode = #tpu.pipeline_mode<synchronous>, transform_indices = @transform_1, window_bounds = array<i64: 128, 48>}, {transform_indices = @transform_2, window_bounds = array<i64: 1, 128, 64>}]} {
    %c0 = arith.constant 0 : index
    %c0_0 = arith.constant 0 : index
    %c0_1 = arith.constant 0 : index
    %0 = vector.load %arg2[%c0, %c0_0, %c0_1] : memref<1x3x64xi32, #tpu.memory_space<vmem>>, vector<1x3x64xi32>
    %1 = vector.shape_cast %0 : vector<1x3x64xi32> to vector<3x64xi32>
    %2 = tpu.iota {dimensions = array<i32: 0>} : vector<48x64xi32>
    %3 = vector.extract_strided_slice %1 {offsets = [0, 0], sizes = [1, 64], strides = [1, 1]} : vector<3x64xi32> to vector<1x64xi32>
    %4 = vector.broadcast %3 : vector<1x64xi32> to vector<48x64xi32>
    %5 = arith.cmpi eq, %4, %2 : vector<48x64xi32>
    %6 = vector.extract_strided_slice %1 {offsets = [1, 0], sizes = [1, 64], strides = [1, 1]} : vector<3x64xi32> to vector<1x64xi32>
    %c16_i32 = arith.constant 16 : i32
    %7 = vector.broadcast %c16_i32 : i32 to vector<1x64xi32>
    %8 = arith.addi %6, %7 : vector<1x64xi32>
    %9 = vector.broadcast %8 : vector<1x64xi32> to vector<48x64xi32>
    %10 = arith.cmpi eq, %9, %2 : vector<48x64xi32>
    %11 = arith.ori %5, %10 : vector<48x64xi1>
    %12 = vector.extract_strided_slice %1 {offsets = [2, 0], sizes = [1, 64], strides = [1, 1]} : vector<3x64xi32> to vector<1x64xi32>
    %c32_i32 = arith.constant 32 : i32
    %13 = vector.broadcast %c32_i32 : i32 to vector<1x64xi32>
    %14 = arith.addi %12, %13 : vector<1x64xi32>
    %15 = vector.broadcast %14 : vector<1x64xi32> to vector<48x64xi32>
    %16 = arith.cmpi eq, %15, %2 : vector<48x64xi32>
    %17 = arith.ori %11, %16 : vector<48x64xi1>
    %18 = arith.extui %17 : vector<48x64xi1> to vector<48x64xi32>
    %19 = arith.sitofp %18 : vector<48x64xi32> to vector<48x64xf32>
    %c0_2 = arith.constant 0 : index
    %c0_3 = arith.constant 0 : index
    %20 = vector.load %arg3[%c0_2, %c0_3] : memref<128x48xf32, #tpu.memory_space<vmem>>, vector<128x48xf32>
    %cst = arith.constant dense<0.000000e+00> : vector<128x64xf32>
    %21 = tpu.matmul %20, %19, %cst {dimension_numbers = #tpu.dot_dimension_numbers<[1], [0], [0], [1], [0, 0, 1, 1], [], []>} : vector<128x48xf32>, vector<48x64xf32>, vector<128x64xf32> -> vector<128x64xf32>
    %c0_4 = arith.constant 0 : index
    %c0_5 = arith.constant 0 : index
    %c0_6 = arith.constant 0 : index
    %22 = vector.load %arg4[%c0_4, %c0_5, %c0_6] : memref<1x128x64xf32, #tpu.memory_space<vmem>>, vector<1x128x64xf32>
    %23 = vector.shape_cast %22 : vector<1x128x64xf32> to vector<128x64xf32>
    %24 = vector.shape_cast %21 : vector<128x64xf32> to vector<1x128x64xf32>
    tpu.vector_store %arg4[%c0_4, %c0_5, %c0_6], %24 {strides = array<i32>} : memref<1x128x64xf32, #tpu.memory_space<vmem>>, vector<1x128x64xf32>,
    return
  }
  func.func @transform_0(%arg0: i32, %arg1: i32) -> (i32, i32, i32) {
    %c0_i32 = arith.constant 0 : i32
    %c0_i32_0 = arith.constant 0 : i32
    return %arg0, %c0_i32, %arg1 : i32, i32, i32
  }
  func.func @transform_1(%arg0: i32, %arg1: i32) -> (i32, i32) {
    %c0_i32 = arith.constant 0 : i32
    %c0_i32_0 = arith.constant 0 : i32
    %c0_i32_1 = arith.constant 0 : i32
    return %c0_i32, %c0_i32_0 : i32, i32
  }
  func.func @transform_2(%arg0: i32, %arg1: i32) -> (i32, i32, i32) {
    %c0_i32 = arith.constant 0 : i32
    %c0_i32_0 = arith.constant 0 : i32
    return %arg0, %c0_i32, %arg1 : i32, i32, i32
  }
}

</mosaic_0001>

<bundles_post_ra>
// kernel: tpu_custom_call.1
= control target key start
LH: loop header
LB: loop body
LE: loop exit
PB: predicated region body
PF: predicated region fallthrough
CT: control target
= control target key end

     0   :  { %s576_s9 = smov 0   ;;  %s578_s10 = smov 0   ;;  %s722_s0 = inlined_call_operand.vmem [shape: s32[2,3,64], index: 0, kind: input, shape index: {}]   ;;  %s723_s1 = inlined_call_operand.vmem [shape: f32[128,48], index: 1, kind: input, shape index: {}]   ;;  %s724_s2 = inlined_call_operand.vmem [shape: f32[2,128,64], index: 2, kind: output, shape index: {}]  }
   0x1   :  { %s580_s11 = smov 0  }
   0x2 LB: > { %s24_s12 = sadd.s32 1, %s554_s10  ;;  %p458_p0 = scmp.ge.s32.totalorder %s558_s11, 1  ;;  %s558_s11 = sphi %s580_s11, %s12_s11   ;;  %s554_s10 = sphi %s578_s10, %s726_s10   ;;  %s550_s9 = sphi %s576_s9, %s725_s9  }
   0x3   : > { %p26_p1 = scmp.ge.s32.totalorder %s24_s12, 2  ;;  %p130_p2 = scmp.lt.s32.totalorder %s558_s11, 3 }
   0x5   : > { %s728_s12 = smov (%p26_p1, %s24_s12), 0  ;;  %p131_p3 = pnand %p458_p0, %p130_p2 }
   0x6   : > { %p157_p4 = scmp.lt.s32.totalorder (!%p131_p3), %s550_s9, 1 }
   0x7   : > { %134 = sbr.rel (%p131_p3) target bundleno = 192 (0xc0), region = 28 }
   0xc   : > { %v173_v0 = vlaneseq  ;;  %s730_s9 = smov (!%p157_p4, %s550_s9), 1  ;;  %v560_v13 = vmov 1.0   ;;  %v235_v14 = vld [vmem:[%s723_s1 + $0x40] sm:$0xff]  ;;  %v236_v18 = vld [vmem:[%s723_s1 + $0x48] sm:$0xff]  ;;  %v237_v22 = vld [vmem:[%s723_s1 + $0x50] sm:$0xff] }
   0xd   : > { %s459_s13 = sshll.u32 %s730_s9, 2  ;;  %v239_v15 = vld [vmem:[%s723_s1 + $0x60] sm:$0xff]  ;;  %v240_v19 = vld [vmem:[%s723_s1 + $0x68] sm:$0xff]  ;;  %v241_v23 = vld [vmem:[%s723_s1 + $0x70] sm:$0xff]  ;;  %s492_s25 = sshll.u32 %s730_s9, 7 }
   0xe   : > { %v596_v1 = vshrl.u32 %v173_v0, 7  ;;  %s163_s16 = scalar_lea.vmem %s722_s0, %s459_s13  ;;  %v227_v16 = vld [vmem:[%s723_s1] sm:$0xff]  ;;  %v228_v20 = vld [vmem:[%s723_s1 + $0x8] sm:$0xff]  ;;  %v229_v24 = vld [vmem:[%s723_s1 + $0x10] sm:$0xff]  ;;  %s679_s28 = scalar_lea.vmem %s724_s2, %s492_s25 }
   0xf   : > { %v172_v3 = vld [vmem:[%s163_s16] sm:$0x7]  ;;  %v232_v21 = vld [vmem:[%s723_s1 + $0x28] sm:$0xff]  ;;  %v233_v25 = vld [vmem:[%s723_s1 + $0x30] sm:$0xff] }
  0x10   : > { %v179_v2 = vadd.s32 40, %v596_v1  ;;  %v180_v4 = vperm.slane %v172_v3, 0  ;;  %v187_v5 = vadd.s32 16, %v172_v3  ;;  %v201_v6 = vadd.s32 32, %v172_v3  ;;  %v231_v17 = vld [vmem:[%s723_s1 + $0x20] sm:$0xff]  ;;  %v238_v26 = vld [vmem:[%s723_s1 + $0x58] sm:$0xff] }
  0x11   : > { %v178_v7 = vadd.s32 32, %v596_v1  ;;  %v177_v10 = vadd.s32 24, %v596_v1  ;;  %v176_v11 = vadd.s32 16, %v596_v1  ;;  %v175_v12 = vadd.s32 8, %v596_v1  ;;  %v242_v27 = vld [vmem:[%s723_s1 + $0x78] sm:$0xff] }
  0x12   : > { %vm186_vm0 = vcmp.eq.s32.totalorder %v180_v4, %v179_v2  ;;  %v188_v8 = vperm.slane %v187_v5, 1  ;;  %v202_v9 = vperm.slane %v201_v6, 2  ;;  %v230_v28 = vld [vmem:[%s723_s1 + $0x18] sm:$0xff] }
  0x13   : > { %vm185_vm3 = vcmp.eq.s32.totalorder %v180_v4, %v178_v7  ;;  %vm184_vm8 = vcmp.eq.s32.totalorder %v180_v4, %v177_v10  ;;  %vm183_vm13 = vcmp.eq.s32.totalorder %v180_v4, %v176_v11  ;;  %v234_v29 = vld [vmem:[%s723_s1 + $0x38] sm:$0xff] }
  0x14   : > { %vm194_vm1 = vcmp.eq.s32.totalorder %v188_v8, %v179_v2  ;;  %vm208_vm2 = vcmp.eq.s32.totalorder %v202_v9, %v179_v2  ;;  %vm193_vm4 = vcmp.eq.s32.totalorder %v188_v8, %v178_v7  ;;  %vm207_vm6 = vcmp.eq.s32.totalorder %v202_v9, %v178_v7 }
  0x15   : > { %vm200_vm5 = vmor %vm186_vm0, %vm194_vm1  ;;  %vm192_vm9 = vcmp.eq.s32.totalorder %v188_v8, %v177_v10  ;;  %vm206_vm11 = vcmp.eq.s32.totalorder %v202_v9, %v177_v10  ;;  %vm191_vm14 = vcmp.eq.s32.totalorder %v188_v8, %v176_v11  ;;  %vm205_vm0 = vcmp.eq.s32.totalorder %v202_v9, %v176_v11 }
  0x16   : > { %vm214_vm7 = vmor %vm200_vm5, %vm208_vm2  ;;  %vm182_vm2 = vcmp.eq.s32.totalorder %v180_v4, %v175_v12  ;;  %vm190_vm5 = vcmp.eq.s32.totalorder %v188_v8, %v175_v12 }
  0x17   : > { %494 = vmatpush.msk.msra.mxu2 %vm214_vm7, %v560_v13  ;;  %495 = vmatpush.msk.msra.mxu3 %vm214_vm7, %v560_v13  ;;  %vm199_vm10 = vmor %vm185_vm3, %vm193_vm4  ;;  %vm204_vm4 = vcmp.eq.s32.totalorder %v202_v9, %v175_v12 }
  0x18   : > { %vm213_vm12 = vmor %vm199_vm10, %vm207_vm6  ;;  %468 = vmatpush.msk.msra.mxu0 %vm214_vm7, %v560_v13  ;;  %493 = vmatpush.msk.msra.mxu1 %vm214_vm7, %v560_v13  ;;  %vm181_vm7 = vcmp.eq.s32.totalorder %v180_v4, %v596_v1  ;;  %vm189_vm10 = vcmp.eq.s32.totalorder %v188_v8, %v596_v1 }
  0x19   : > { %497 = vmatpush.msk.msra.mxu2 %vm213_vm12, %v560_v13  ;;  %498 = vmatpush.msk.msra.mxu3 %vm213_vm12, %v560_v13  ;;  %vm198_vm15 = vmor %vm184_vm8, %vm192_vm9  ;;  %vm203_vm9 = vcmp.eq.s32.totalorder %v202_v9, %v596_v1 }
  0x1a   : > { %vm212_vm1 = vmor %vm198_vm15, %vm206_vm11  ;;  %469 = vmatpush.msk.msra.mxu0 %vm213_vm12, %v560_v13  ;;  %496 = vmatpush.msk.msra.mxu1 %vm213_vm12, %v560_v13  ;;  %vm357_vm15 = vcmask 523264  }
  0x1b   : > { %500 = vmatpush.msk.msra.mxu2 %vm212_vm1, %v560_v13  ;;  %501 = vmatpush.msk.msra.mxu3 %vm212_vm1, %v560_v13  ;;  %vm197_vm3 = vmor %vm183_vm13, %vm191_vm14  ;;  %vm243_vm13 = vcmask 392192  }
  0x1c   : > { %vm211_vm6 = vmor %vm197_vm3, %vm205_vm0  ;;  %470 = vmatpush.msk.msra.mxu0 %vm212_vm1, %v560_v13  ;;  %499 = vmatpush.msk.msra.mxu1 %vm212_vm1, %v560_v13 }
  0x1d   : > { %503 = vmatpush.msk.msra.mxu2 %vm211_vm6, %v560_v13  ;;  %504 = vmatpush.msk.msra.mxu3 %vm211_vm6, %v560_v13  ;;  %vm196_vm8 = vmor %vm182_vm2, %vm190_vm5 }
  0x1e   : > { %vm210_vm11 = vmor %vm196_vm8, %vm204_vm4  ;;  %471 = vmatpush.msk.msra.mxu0 %vm211_vm6, %v560_v13  ;;  %502 = vmatpush.msk.msra.mxu1 %vm211_vm6, %v560_v13 }
  0x1f   : > { %506 = vmatpush.msk.msra.mxu2 %vm210_vm11, %v560_v13  ;;  %507 = vmatpush.msk.msra.mxu3 %vm210_vm11, %v560_v13  ;;  %vm195_vm12 = vmor %vm181_vm7, %vm189_vm10 }
  0x20   : > { %vm209_vm14 = vmor %vm195_vm12, %vm203_vm9  ;;  %472 = vmatpush.msk.msra.mxu0 %vm210_vm11, %v560_v13  ;;  %505 = vmatpush.msk.msra.mxu1 %vm210_vm11, %v560_v13 }
  0x21   : > { %509 = vmatpush.msk.msra.mxu2 %vm209_vm14, %v560_v13  ;;  %510 = vmatpush.msk.msra.mxu3 %vm209_vm14, %v560_v13 }
  0x22   : > { %482 = vmatmul.msk.f32.vlgmr.msra.gmra.mxu2 %vm243_vm13, %v235_v14  ;;  %486 = vmatmul.msk.f32.vlgmr.msra.gmra.mxu3 %vm243_vm13, %v239_v15 }
  0x23   : > { %473 = vmatpush.msk.msra.mxu0 %vm209_vm14, %v560_v13  ;;  %508 = vmatpush.msk.msra.mxu1 %vm209_vm14, %v560_v13 }
  0x24   : > { %474 = vmatmul.msk.f32.vlgmr.msra.gmra.mxu0 %vm243_vm13, %v227_v16  ;;  %478 = vmatmul.msk.f32.vlgmr.msra.gmra.mxu1 %vm243_vm13, %v231_v17 }
  0x2a   : > { %483 = vmatmul.msk.f32.gmra.mxu2 %vm243_vm13, %v236_v18  ;;  %487 = vmatmul.msk.f32.gmra.mxu3 %vm243_vm13, %v240_v19 }
  0x2c   : > { %475 = vmatmul.msk.f32.gmra.mxu0 %vm243_vm13, %v228_v20  ;;  %479 = vmatmul.msk.f32.gmra.mxu1 %vm243_vm13, %v232_v21 }
  0x32   : > { %484 = vmatmul.msk.f32.gmra.mxu2 %vm243_vm13, %v237_v22  ;;  %488 = vmatmul.msk.f32.gmra.mxu3 %vm243_vm13, %v241_v23 }
  0x34   : > { %476 = vmatmul.msk.f32.gmra.mxu0 %vm243_vm13, %v229_v24  ;;  %480 = vmatmul.msk.f32.gmra.mxu1 %vm243_vm13, %v233_v25 }
  0x3a   : > { %485 = vmatmul.msk.f32.gmra.mxu2 %vm243_vm13, %v238_v26  ;;  %489 = vmatmul.msk.f32.gmra.mxu3 %vm243_vm13, %v242_v27 }
  0x3c   : > { %477 = vmatmul.msk.f32.gmra.mxu0 %vm243_vm13, %v230_v28  ;;  %481 = vmatmul.msk.f32.gmra.mxu1 %vm243_vm13, %v234_v29 }
  0xa1   : > { %v309_v30 = vpop.f32.mrf.mxu0  ;;  %v321_v31 = vpop.f32.mrf.mxu1 }
  0xa2   : > { %358 = vst.msk [vmem:[%s679_s28] sm:$0xff] %vm357_vm15, %v309_v30 }
  0xa3   : > { %362 = vst.msk [vmem:[%s679_s28 + $0x20] sm:$0xff] %vm357_vm15, %v321_v31 }
  0xa5   : > { %v333_v32 = vpop.f32.mrf.mxu2  ;;  %v345_v33 = vpop.f32.mrf.mxu3 }
  0xa6   : > { %366 = vst.msk [vmem:[%s679_s28 + $0x40] sm:$0xff] %vm357_vm15, %v333_v32 }
  0xa7   : > { %370 = vst.msk [vmem:[%s679_s28 + $0x60] sm:$0xff] %vm357_vm15, %v345_v33 }
  0xa9   : > { %v312_v34 = vpop.f32.mrf.mxu0  ;;  %v324_v35 = vpop.f32.mrf.mxu1 }
  0xaa   : > { %359 = vst.msk [vmem:[%s679_s28 + $0x8] sm:$0xff] %vm357_vm15, %v312_v34 }
  0xab   : > { %363 = vst.msk [vmem:[%s679_s28 + $0x28] sm:$0xff] %vm357_vm15, %v324_v35 }
  0xad   : > { %v336_v36 = vpop.f32.mrf.mxu2  ;;  %v348_v37 = vpop.f32.mrf.mxu3 }
  0xae   : > { %367 = vst.msk [vmem:[%s679_s28 + $0x48] sm:$0xff] %vm357_vm15, %v336_v36 }
  0xaf   : > { %371 = vst.msk [vmem:[%s679_s28 + $0x68] sm:$0xff] %vm357_vm15, %v348_v37 }
  0xb1   : > { %v315_v38 = vpop.f32.mrf.mxu0  ;;  %v327_v39 = vpop.f32.mrf.mxu1 }
  0xb2   : > { %360 = vst.msk [vmem:[%s679_s28 + $0x10] sm:$0xff] %vm357_vm15, %v315_v38 }
  0xb3   : > { %364 = vst.msk [vmem:[%s679_s28 + $0x30] sm:$0xff] %vm357_vm15, %v327_v39 }
  0xb5   : > { %v339_v40 = vpop.f32.mrf.mxu2  ;;  %v351_v41 = vpop.f32.mrf.mxu3 }
  0xb6   : > { %368 = vst.msk [vmem:[%s679_s28 + $0x50] sm:$0xff] %vm357_vm15, %v339_v40 }
  0xb7   : > { %372 = vst.msk [vmem:[%s679_s28 + $0x70] sm:$0xff] %vm357_vm15, %v351_v41 }
  0xb9   : > { %v318_v42 = vpop.f32.mrf.mxu0  ;;  %v330_v43 = vpop.f32.mrf.mxu1 }
  0xba   : > { %361 = vst.msk [vmem:[%s679_s28 + $0x18] sm:$0xff] %vm357_vm15, %v318_v42 }
  0xbb   : > { %365 = vst.msk [vmem:[%s679_s28 + $0x38] sm:$0xff] %vm357_vm15, %v330_v43 }
  0xbd   : > { %v342_v44 = vpop.f32.mrf.mxu2  ;;  %v354_v45 = vpop.f32.mrf.mxu3 }
  0xbe   : > { %369 = vst.msk [vmem:[%s679_s28 + $0x58] sm:$0xff] %vm357_vm15, %v342_v44 }
  0xbf   : > { %373 = vst.msk [vmem:[%s679_s28 + $0x78] sm:$0xff] %vm357_vm15, %v354_v45 }
  0xc0 PF: > { %s12_s11 = sadd.s32 1, %s558_s11   ;;  %s725_s9 = smov %s554_s10 }
  0xc1   : > { %p9_p5 = scmp.ge.s32.totalorder %s12_s11, 4   ;;  %s726_s10 = smov %s728_s12 }
  0xc3   :  { %11 = sbr.rel (!%p9_p5) target bundleno = 2 (0x2), region = 58 }

</bundles_post_ra>
